<compile_context>
chip_gen: v5e
topology: v5e:2x2
jax: 0.10.0
libtpu: 0.0.40
codegen_flags: <defaults>
</compile_context>

<pallas_src>
import math
from typing import NamedTuple

import jax
import jax.numpy as jnp
from jax import lax
from jax.experimental import pallas as pl
from jax.experimental.pallas import tpu as pltpu

_INV_SQRT2 = 1.0 / math.sqrt(2.0)


def _round_up(v, m):
    return (v + m - 1) // m * m


def _ceil_div(a, b):
    return -(-a // b)


class MlpParams(NamedTuple):
    w1: jax.Array      # (c_in_p, hid_p)   compute dtype (bf16)
    b1: jax.Array      # (1, hid_p)        f32
    w2: jax.Array      # (hid_p, c_out_p)  compute dtype (bf16)
    b2: jax.Array      # (1, c_out_p)      f32
    c_in: int
    c_out: int
    hk: int            # hidden-chunk width (lanes, multiple of 128)
    n_hk: int          # number of hidden chunks


def prepare_mlp_params(w1, b1, w2, b2, *, compute_dtype=jnp.bfloat16,
                       hk_target=512):
    """Pad + cast the Linear weights once.

    Cache the returned MlpParams across calls: re-padding/casting every call
    costs an extra HBM pass over both weight matrices.  Zero padding of
    C_in / H / C_out is exactly correct for Linear + GELU (GELU(0) == 0).
    """
    c_in, hidden = w1.shape
    c_out = w2.shape[1]

    c_in_p = _round_up(c_in, 128)
    c_out_p = _round_up(c_out, 128)

    hid_p = _round_up(hidden, 128)
    # Hidden-dim chunking keeps the (TM, HK) f32 intermediate small so large
    # hidden dims fit v7x's 64 MiB per-TC VMEM.
    hk_target_p = max(128, _round_up(hk_target, 128))
    n_hk = max(1, _ceil_div(hid_p, hk_target_p))
    hk = _round_up(_ceil_div(hid_p, n_hk), 128)
    hid_p = n_hk * hk

    w1_p = jnp.pad(w1, ((0, c_in_p - c_in), (0, hid_p - hidden))).astype(compute_dtype)
    w2_p = jnp.pad(w2, ((0, hid_p - hidden), (0, c_out_p - c_out))).astype(compute_dtype)
    # Biases stay f32: bias add + exact GELU run after f32 MXU accumulation.
    b1_p = jnp.pad(b1, (0, hid_p - hidden)).astype(jnp.float32).reshape(1, hid_p)
    b2_p = jnp.pad(b2, (0, c_out_p - c_out)).astype(jnp.float32).reshape(1, c_out_p)
    return MlpParams(w1_p, b1_p, w2_p, b2_p, int(c_in), int(c_out), int(hk), int(n_hk))


def _make_mlp_kernel(n_hk, hk, compute_dtype):
    def _chunk(x, w1_ref, b1_ref, w2_ref, k):
        s = slice(k * hk, (k + 1) * hk)                     # static slice
        # fc1 on the MXU (bf16 operands, f32 accumulation)
        h = jnp.dot(x, w1_ref[:, s], preferred_element_type=jnp.float32)
        h = h + b1_ref[:, s]                                # (1, HK) broadcast, f32
        # exact erf-GELU (matches nn.GELU() default), f32 on VPU/EUP
        h = 0.5 * h * (1.0 + lax.erf(h * _INV_SQRT2))
        # fc2 contribution on the MXU
        return jnp.dot(h.astype(compute_dtype), w2_ref[s, :],
                       preferred_element_type=jnp.float32)

    if n_hk == 1:
        def kernel(x_ref, w1_ref, b1_ref, w2_ref, b2_ref, o_ref):
            x = x_ref[...].astype(compute_dtype)            # in-kernel cast
            y = _chunk(x, w1_ref, b1_ref, w2_ref, 0)
            o_ref[...] = (y + b2_ref[...]).astype(o_ref.dtype)
    else:
        def kernel(x_ref, w1_ref, b1_ref, w2_ref, b2_ref, o_ref, acc_ref):
            x = x_ref[...].astype(compute_dtype)            # in-kernel cast
            acc_ref[...] = _chunk(x, w1_ref, b1_ref, w2_ref, 0)
            for k in range(1, n_hk):                        # static unrolled loop
                acc_ref[...] += _chunk(x, w1_ref, b1_ref, w2_ref, k)
            o_ref[...] = (acc_ref[...] + b2_ref[...]).astype(o_ref.dtype)

    return kernel


def mlp_pallas(x, params: MlpParams, *, tm=512):
    """x: (..., C_in). params: output of prepare_mlp_params. Returns (..., C_out)."""
    orig_shape = x.shape
    c_in, c_out = params.c_in, params.c_out
    assert orig_shape[-1] == c_in
    compute_dtype = params.w1.dtype
    c_in_p, hid_p = params.w1.shape
    c_out_p = params.w2.shape[1]
    hk, n_hk = params.hk, params.n_hk

    x2d = x.reshape(-1, c_in)
    m = x2d.shape[0]

    # Token tile: multiple of 16 sublanes.  Ragged tail handled by padding m
    # up to a tile multiple.  (For v7x's 2 TCs, prefer grid_m >= 2 and even
    # when there is enough work; at small m a single tile is unavoidable.)
    tm_eff = min(_round_up(tm, 16), _round_up(m, 16))
    m_p = _round_up(m, tm_eff)
    grid_m = m_p // tm_eff

    # Keep x in its native dtype (cast to bf16 inside the kernel, hidden under
    # the MXU); only pad when the shape actually needs it.
    if (m_p, c_in_p) != (m, c_in):
        x2d = jnp.pad(x2d, ((0, m_p - m), (0, c_in_p - c_in)))

    # ---- VMEM budget (weights counted once: single-buffered) ---------------
    xbytes = jnp.dtype(x.dtype).itemsize
    obytes = jnp.dtype(x.dtype).itemsize
    cbytes = jnp.dtype(compute_dtype).itemsize
    bytes_needed = (
        2 * tm_eff * c_in_p * xbytes                         # x tile, double-buffered
        + 2 * tm_eff * c_out_p * obytes                      # y tile, double-buffered
        + (c_in_p * hid_p + hid_p * c_out_p) * cbytes        # weights, single-buffered
        + (hid_p + c_out_p) * 4                              # biases
        + tm_eff * c_in_p * cbytes                           # bf16-cast x tile
        + tm_eff * hk * (4 + cbytes)                         # f32 hidden chunk + bf16 recast
        + tm_eff * c_out_p * 4                               # f32 accumulator
    )
    # Fixed headroom for compiler-internal scratch; cap well under v7x's
    # 64 MiB per-TC VMEM and avoid over-reserving on v5e/v6e.
    vmem_limit = int(min(48 * 2**20, max(12 * 2**20, bytes_needed + 4 * 2**20)))

    scratch = [] if n_hk == 1 else [pltpu.VMEM((tm_eff, c_out_p), jnp.float32)]
    resident = dict(pipeline_mode=pl.Buffered(1))            # constant index map

    out = pl.pallas_call(
        _make_mlp_kernel(n_hk, hk, compute_dtype),
        out_shape=jax.ShapeDtypeStruct((m_p, c_out_p), x.dtype),
        grid_spec=pltpu.PrefetchScalarGridSpec(
            num_scalar_prefetch=0,
            grid=(grid_m,),
            in_specs=[
                pl.BlockSpec((tm_eff, c_in_p), lambda i: (i, 0)),            # token tile
                pl.BlockSpec((c_in_p, hid_p), lambda i: (0, 0), **resident),  # w1
                pl.BlockSpec((1, hid_p), lambda i: (0, 0), **resident),       # b1
                pl.BlockSpec((hid_p, c_out_p), lambda i: (0, 0), **resident), # w2
                pl.BlockSpec((1, c_out_p), lambda i: (0, 0), **resident),     # b2
            ],
            out_specs=pl.BlockSpec((tm_eff, c_out_p), lambda i: (i, 0)),
            scratch_shapes=scratch,
        ),
        compiler_params=pltpu.CompilerParams(
            dimension_semantics=("parallel",),
            vmem_limit_bytes=vmem_limit,
        ),
    )(x2d, params.w1, params.b1, params.w2, params.b2)

    out = out[:m, :c_out]
    return out.reshape(*orig_shape[:-1], c_out)


def _reference_mlp(x, w1, b1, w2, b2):
    h = x @ w1 + b1
    h = 0.5 * h * (1.0 + lax.erf(h / jnp.sqrt(2.0)))
    return h @ w2 + b2


if __name__ == "__main__":
    def make_case(key, in_features, hidden_features, out_features, B, N):
        kx, k1, kb1, k2, kb2 = jax.random.split(key, 5)
        x = jax.random.normal(kx, (B, N, in_features), dtype=jnp.float32)
        # nn.Linear-style init: weight (out, in) stored transposed as (in, out)
        lim1 = 1.0 / math.sqrt(in_features)
        w1 = jax.random.uniform(k1, (in_features, hidden_features),
                                minval=-lim1, maxval=lim1, dtype=jnp.float32)
        b1 = jax.random.uniform(kb1, (hidden_features,),
                                minval=-lim1, maxval=lim1, dtype=jnp.float32)
        lim2 = 1.0 / math.sqrt(hidden_features)
        w2 = jax.random.uniform(k2, (hidden_features, out_features),
                                minval=-lim2, maxval=lim2, dtype=jnp.float32)
        b2 = jax.random.uniform(kb2, (out_features,),
                                minval=-lim2, maxval=lim2, dtype=jnp.float32)
        return x, w1, b1, w2, b2

    key = jax.random.PRNGKey(0)
    ka, kb = jax.random.split(key)

    # Case 1: single hidden chunk; ragged token tail (m=120, tm=64 -> grid=2)
    # plus channel padding (32 -> 128 lanes).
    x, w1, b1, w2, b2 = make_case(ka, 32, 64, 32, B=2, N=60)
    params = prepare_mlp_params(w1, b1, w2, b2)
    y = jax.block_until_ready(mlp_pallas(x, params, tm=64))
    y_ref = _reference_mlp(x, w1, b1, w2, b2)
    assert y.shape == (2, 60, 32)
    # bf16 MXU operands with f32 accumulation -> loosened tolerance vs f32 ref.
    assert jnp.allclose(y, y_ref, atol=3e-2, rtol=2e-2), float(
        jnp.max(jnp.abs(y - y_ref)))

    # Case 2: forces the hidden-chunked accumulator path (n_hk > 1).
    x, w1, b1, w2, b2 = make_case(kb, 32, 256, 32, B=2, N=60)
    params = prepare_mlp_params(w1, b1, w2, b2, hk_target=128)
    assert params.n_hk == 2
    y = jax.block_until_ready(mlp_pallas(x, params, tm=64))
    y_ref = _reference_mlp(x, w1, b1, w2, b2)
    assert jnp.allclose(y, y_ref, atol=3e-2, rtol=2e-2), float(
        jnp.max(jnp.abs(y - y_ref)))

    print("KERNEL_OK")
</pallas_src>

<mosaic_0001>
module attributes {stable_mosaic.version = 11 : i64} {
  func.func @kernel(%arg0: i32, %arg1: memref<64x128xf32, #tpu.memory_space<vmem>>, %arg2: memref<128x128xbf16, #tpu.memory_space<vmem>>, %arg3: memref<1x128xf32, #tpu.memory_space<vmem>>, %arg4: memref<128x128xbf16, #tpu.memory_space<vmem>>, %arg5: memref<1x128xf32, #tpu.memory_space<vmem>>, %arg6: memref<64x128xf32, #tpu.memory_space<vmem>>) attributes {dimension_semantics = [#tpu.dimension_semantics<parallel>], iteration_bounds = array<i64: 2>, scalar_prefetch = 0 : i64, scratch_operands = 0 : i64, tpu.core_type = #tpu.core_type<tc>, window_params = [{transform_indices = @transform_0, window_bounds = array<i64: 64, 128>}, {pipeline_mode = #tpu.pipeline_mode<synchronous>, transform_indices = @transform_1, window_bounds = array<i64: 128, 128>}, {pipeline_mode = #tpu.pipeline_mode<synchronous>, transform_indices = @transform_2, window_bounds = array<i64: 1, 128>}, {pipeline_mode = #tpu.pipeline_mode<synchronous>, transform_indices = @transform_3, window_bounds = array<i64: 128, 128>}, {pipeline_mode = #tpu.pipeline_mode<synchronous>, transform_indices = @transform_4, window_bounds = array<i64: 1, 128>}, {transform_indices = @transform_5, window_bounds = array<i64: 64, 128>}]} {
    %c0 = arith.constant 0 : index
    %c0_0 = arith.constant 0 : index
    %0 = vector.load %arg1[%c0, %c0_0] : memref<64x128xf32, #tpu.memory_space<vmem>>, vector<64x128xf32>
    %1 = arith.truncf %0 : vector<64x128xf32> to vector<64x128xbf16>
    %c0_1 = arith.constant 0 : index
    %c0_2 = arith.constant 0 : index
    %2 = vector.load %arg2[%c0_1, %c0_2] : memref<128x128xbf16, #tpu.memory_space<vmem>>, vector<128x128xbf16>
    %cst = arith.constant dense<0.000000e+00> : vector<64x128xf32>
    %3 = tpu.matmul %1, %2, %cst {dimension_numbers = #tpu.dot_dimension_numbers<[1], [0], [0], [1], [0, 0, 1, 1], [], []>} : vector<64x128xbf16>, vector<128x128xbf16>, vector<64x128xf32> -> vector<64x128xf32>
    %c0_3 = arith.constant 0 : index
    %c0_4 = arith.constant 0 : index
    %4 = vector.load %arg3[%c0_3, %c0_4] : memref<1x128xf32, #tpu.memory_space<vmem>>, vector<1x128xf32>
    %5 = vector.broadcast %4 : vector<1x128xf32> to vector<64x128xf32>
    %6 = arith.addf %3, %5 : vector<64x128xf32>
    %cst_5 = arith.constant 5.000000e-01 : f32
    %7 = vector.broadcast %cst_5 : f32 to vector<64x128xf32>
    %8 = arith.mulf %7, %6 : vector<64x128xf32>
    %cst_6 = arith.constant 0.707106769 : f32
    %9 = vector.broadcast %cst_6 : f32 to vector<64x128xf32>
    %10 = arith.mulf %6, %9 : vector<64x128xf32>
    %11 = math.erf %10 : vector<64x128xf32>
    %cst_7 = arith.constant 1.000000e+00 : f32
    %12 = vector.broadcast %cst_7 : f32 to vector<64x128xf32>
    %13 = arith.addf %12, %11 : vector<64x128xf32>
    %14 = arith.mulf %8, %13 : vector<64x128xf32>
    %15 = arith.truncf %14 : vector<64x128xf32> to vector<64x128xbf16>
    %c0_8 = arith.constant 0 : index
    %c0_9 = arith.constant 0 : index
    %16 = vector.load %arg4[%c0_8, %c0_9] : memref<128x128xbf16, #tpu.memory_space<vmem>>, vector<128x128xbf16>
    %cst_10 = arith.constant dense<0.000000e+00> : vector<64x128xf32>
    %17 = tpu.matmul %15, %16, %cst_10 {dimension_numbers = #tpu.dot_dimension_numbers<[1], [0], [0], [1], [0, 0, 1, 1], [], []>} : vector<64x128xbf16>, vector<128x128xbf16>, vector<64x128xf32> -> vector<64x128xf32>
    %c0_11 = arith.constant 0 : index
    %c0_12 = arith.constant 0 : index
    %18 = vector.load %arg5[%c0_11, %c0_12] : memref<1x128xf32, #tpu.memory_space<vmem>>, vector<1x128xf32>
    %19 = vector.broadcast %18 : vector<1x128xf32> to vector<64x128xf32>
    %20 = arith.addf %17, %19 : vector<64x128xf32>
    %c0_13 = arith.constant 0 : index
    %c0_14 = arith.constant 0 : index
    %21 = vector.load %arg6[%c0_13, %c0_14] : memref<64x128xf32, #tpu.memory_space<vmem>>, vector<64x128xf32>
    tpu.vector_store %arg6[%c0_13, %c0_14], %20 {strides = array<i32>} : memref<64x128xf32, #tpu.memory_space<vmem>>, vector<64x128xf32>,
    return
  }
  func.func @transform_0(%arg0: i32) -> (i32, i32) {
    %c0_i32 = arith.constant 0 : i32
    %c0_i32_0 = arith.constant 0 : i32
    return %arg0, %c0_i32 : i32, i32
  }
  func.func @transform_1(%arg0: i32) -> (i32, i32) {
    %c0_i32 = arith.constant 0 : i32
    %c0_i32_0 = arith.constant 0 : i32
    %c0_i32_1 = arith.constant 0 : i32
    return %c0_i32, %c0_i32_0 : i32, i32
  }
  func.func @transform_2(%arg0: i32) -> (i32, i32) {
    %c0_i32 = arith.constant 0 : i32
    %c0_i32_0 = arith.constant 0 : i32
    %c0_i32_1 = arith.constant 0 : i32
    return %c0_i32, %c0_i32_0 : i32, i32
  }
  func.func @transform_3(%arg0: i32) -> (i32, i32) {
    %c0_i32 = arith.constant 0 : i32
    %c0_i32_0 = arith.constant 0 : i32
    %c0_i32_1 = arith.constant 0 : i32
    return %c0_i32, %c0_i32_0 : i32, i32
  }
  func.func @transform_4(%arg0: i32) -> (i32, i32) {
    %c0_i32 = arith.constant 0 : i32
    %c0_i32_0 = arith.constant 0 : i32
    %c0_i32_1 = arith.constant 0 : i32
    return %c0_i32, %c0_i32_0 : i32, i32
  }
  func.func @transform_5(%arg0: i32) -> (i32, i32) {
    %c0_i32 = arith.constant 0 : i32
    %c0_i32_0 = arith.constant 0 : i32
    return %arg0, %c0_i32 : i32, i32
  }
}

</mosaic_0001>

<bundles_post_ra>
// kernel: tpu_custom_call.1
= control target key start
LH: loop header
LB: loop body
LE: loop exit
PB: predicated region body
PF: predicated region fallthrough
CT: control target
= control target key end

     0   :  { %10 = vsyncpa [#allocation3], 0  ;;  %s1802_s0 = inlined_call_operand.hbm [shape: f32[128,128], index: 0, kind: input, shape index: {}]   ;;  %s1803_s1 = inlined_call_operand.hbm [shape: bf16[128,128], index: 1, kind: input, shape index: {}]   ;;  %s1804_s2 = inlined_call_operand.vmem [shape: f32[1,128], index: 2, kind: input, shape index: {}]   ;;  %s1805_s3 = inlined_call_operand.hbm [shape: bf16[128,128], index: 3, kind: input, shape index: {}]   ;;  %s1806_s4 = inlined_call_operand.vmem [shape: f32[1,128], index: 4, kind: input, shape index: {}]   ;;  %s1807_s5 = inlined_call_operand.hbm [shape: f32[128,128], index: 5, kind: output, shape index: {}]  }
   0x1   :  { %12 = vsyncpa [#allocation3 + $0x1], 0 }
   0x2   :  { %13 = vsyncpa [#allocation6], 0 }
   0x3   :  { %14 = vsyncpa [#allocation4], 0 }
   0x4   :  { %16 = vsyncpa [#allocation4 + $0x1], 0  ;;  %s1373_s18 = smov 0   ;;  %s1375_s19 = smov 0  }
   0x5   :  { %s1377_s20 = smov 0   ;;  %s1379_s21 = smov 0  }
   0x6 LB: > { %s1394_s22 = sadd.s32 4294967295, %s1333_s21   ;;  %s958_s23 = sadd.s32 4294967294, %s1333_s21   ;;  %s1333_s21 = sphi %s1379_s21, %s1819_s21   ;;  %s1329_s20 = sphi %s1377_s20, %s1818_s20   ;;  %s1325_s19 = sphi %s1375_s19, %s1817_s19   ;;  %s1321_s18 = sphi %s1373_s18, %s1816_s18  }
   0x7   : > { %p42_p0 = scmp.ne.s32.totalorder %s1325_s19, %s1321_s18  ;;  %p43_p1 = scmp.eq.s32.totalorder %s1394_s22, 0 }
   0x8   : > { %p150_p2 = scmp.eq.s32.totalorder %s1394_s22, 1  ;;  %p156_p3 = scmp.eq.s32.totalorder %s958_s23, 1 }
   0x9   : > { %p1403_p4 = por %p43_p1, %p42_p0  ;;  %p959_p5 = scmp.ge.s32.totalorder %s1333_s21, 1 }
   0xa   : > { %p1408_p6 = por %p156_p3, %p42_p0  ;;  %p163_p7 = scmp.lt.s32.totalorder %s1333_s21, 3 }
   0xb   : > { %s174_s28 = sshll.u32 %s1803_s1, 4  ;;  %s1335_s30 = smov [#allocation5]   ;;  %s175_s28 = int_to_ptr.hbm [resolvable:$true] %s174_s28 }
   0xc   : > { %p1416_p8 = pnand %p959_p5, %p163_p7  ;;  %s176_s6 = sshll.u32 %s1335_s30, 4  ;;  %s177_s6 = int_to_ptr.vmem [resolvable:$true] %s176_s6 }
   0xd   : > { %s191_s9 = sshll.u32 %s1805_s3, 4  ;;  %s1336_s10 = smov 64   ;;  %s192_s9 = int_to_ptr.hbm [resolvable:$true] %s191_s9 }
   0xe   : > { %p1094_p9 = pneg %p1416_p8  ;;  %s1337_s11 = smov 4  }
   0xf   : > { %s1338_s12 = smov [#allocation7]   ;;  %s1429_s14 = sadd.s32 1, %s1333_s21  }
  0x10   : > { %p1095_p10 = pnand %p1094_p9, %p43_p1  ;;  %s193_s13 = sshll.u32 %s1338_s12, 4  ;;  %s194_s13 = int_to_ptr.vmem [resolvable:$true] %s193_s13 }
  0x11   : > { %s29_s15 = sadd.s32 1, %s1329_s20  ;;  %s26_s16 = ssub.s32 %s1333_s21, %s1429_s14 }
  0x12   : > { %1097 = dma.hbm_to_vmem [thread:$0]  (!%p1095_p10), %s175_s28, 1024, %s177_s6, [#allocation6], %s1336_s10, %s1336_s10, %s1337_s11  }
  0x13   : > { %1100 = dma.hbm_to_vmem [thread:$0]  (!%p1095_p10), %s192_s9, 1024, %s194_s13, [#allocation6], %s1336_s10, %s1336_s10, %s1337_s11  }
  0x14   : > { %p36_p12 = scmp.ne.s32.totalorder %s1329_s20, %s1325_s19  ;;  %p27_p13 = scmp.eq.s32.totalorder %s26_s16, 0 }
  0x15   : > { %p37_p0 = scmp.eq.s32.totalorder %s1333_s21, 0  ;;  %p1111_p5 = scmp.lt.s32.totalorder %s1333_s21, 2 }
  0x16   : > { %p1439_p3 = por %p150_p2, %p36_p12  ;;  %s210_s26 = sand.u32 1, %s1329_s20  }
  0x17   : > { %s1445_s23 = scalar_select %p27_p13, %s1329_s20, %s29_s15  }
  0x18   : > { %p38_p7 = por %p37_p0, %p36_p12  ;;  %s963_s27 = sshll.u32 %s210_s26, 6 }
  0x19   : > { %s1048_s28 = sshll.u32 %s1333_s21, 6  ;;  %s214_s8 = scalar_lea.vmem [#allocation2], %s963_s27 }
  0x1a   : > { %s219_s7 = scalar_lea.hbm %s1802_s0, %s1048_s28  ;;  %s222_s9 = sshll.u32 %s214_s8, 4  ;;  %s223_s9 = int_to_ptr.vmem [resolvable:$true] %s222_s9 }
  0x1b   : > { %s220_s10 = sshll.u32 %s219_s7, 4  ;;  %p1452_p2 = pnand %p1111_p5, %p38_p7  ;;  %s221_s10 = int_to_ptr.hbm [resolvable:$true] %s220_s10 }
  0x1c   : > { %s211_s12 = scalar_lea.sflag [#allocation3], %s210_s26  ;;  %s1233_s13 = sshra.s32 %s221_s10, 4  ;;  %s1234_s13 = int_to_ptr.hbm [resolvable:$true] %s1233_s13 }
  0x1d   : > { %s1235_s15 = scalar_lea.hbm %s1234_s13, 64  ;;  %p1237_p10 = pneg %p1452_p2 }
  0x1e   : > { %p1236_p9 = scmp.ne.s32.totalorder %s1234_s13, %s1235_s15  ;;  %s1240_s28 = scalar_lea.hbm %s1802_s0, 128 }
  0x1f   : > { %p1241_p0 = scmp.lt.s32.totalorder %s1234_s13, %s1802_s0  ;;  %p1242_p5 = scmp.lt.s32.totalorder %s1240_s28, %s1235_s15 }
  0x20   : > { %p1238_p12 = pnand %p1237_p10, %p1236_p9 }
  0x21   : > { %p1243_p7 = por %p1242_p5, %p1241_p0 }
  0x22   : > { %p1239_p13 = pneg %p1238_p12 }
  0x24   : > { %p1244_p11 = pnand %p1243_p7, %p1239_p13 }
  0x26   : > { %1247 = shalt.err (!%p1244_p11)
}
  0x27   : > { %s1339_s26 = smov 128   ;;  %s1340_s7 = smov 8  }
  0x28   : > { %1104 = dma.hbm_to_vmem [thread:$0]  (!%p1452_p2), %s221_s10, 1024, %s223_s9, %s211_s12, %s1339_s26, %s1339_s26, %s1340_s7  }
  0x29   : > { %234 = sbr.rel (%p1416_p8) target bundleno = 462 (0x1ce), region = 40  ;;  %s1469_s8 = sand.u32 (!%p1416_p8), 1, %s1325_s19  }
  0x2a   : > { %s967_s13 = sshll.u32 (!%p1416_p8), %s1469_s8, 6  ;;  %s237_s15 = scalar_lea.sflag (!%p1416_p8), [#allocation3], %s1469_s8 }
  0x2b   : > { %s1475_s16 = scalar_lea.vmem (!%p1416_p8), [#allocation2], %s967_s13 }
  0x2e   : > { %1308 = dma.done.wait (%p1403_p4), %s237_s15, 1024  }
  0x2f   : > { %1310 = vsyncadd (%p1403_p4), %s237_s15, 4294966272 }
  0x30   : > { %1312 = dma.done.wait (%p43_p1), [#allocation6], 2048  }
  0x31   : > { %1314 = vsyncadd (%p43_p1), [#allocation6], 4294965248  ;;  %v1056_v0 = vld [vmem:[#allocation5 + $0x38] sm:$0xff]  ;;  %v1055_v1 = vld [vmem:[#allocation5 + $0x30] sm:$0xff]  ;;  %s277_s11 = scalar_lea.vmem [#allocation8], %s967_s13  ;;  %s1065_s12 = sshll.u32 %s1394_s22, 6 }
  0x32   : > { %360 = vmatpush.bf16.msra.mxu0 %v1056_v0  ;;  %1066 = vmatpush.bf16.msra.mxu2 %v1056_v0  ;;  %v1054_v2 = vld [vmem:[#allocation5 + $0x28] sm:$0xff]  ;;  %v1053_v3 = vld [vmem:[#allocation5 + $0x20] sm:$0xff]  ;;  %v1052_v4 = vld [vmem:[#allocation5 + $0x18] sm:$0xff]  ;;  %s862_s30 = scalar_lea.hbm %s1807_s5, %s1065_s12  ;;  %s863_s6 = sshll.u32 %s277_s11, 4  ;;  %s864_s6 = int_to_ptr.vmem [resolvable:$true] %s863_s6 }
  0x33   : > { %v1051_v5 = vld [vmem:[#allocation5 + $0x10] sm:$0xff]  ;;  %v1050_v6 = vld [vmem:[#allocation5 + $0x8] sm:$0xff]  ;;  %v1049_v7 = vld [vmem:[#allocation5] sm:$0xff]  ;;  %s865_s26 = sshll.u32 %s862_s30, 4  ;;  %s851_s7 = scalar_lea.sflag [#allocation4], %s1469_s8  ;;  %s866_s26 = int_to_ptr.hbm [resolvable:$true] %s865_s26 }
  0x34   : > { %v280_v8 = vld [vmem:[%s1475_s16] sm:$0xff]  ;;  %v281_v9 = vld [vmem:[%s1475_s16 + $0x8] sm:$0xff]  ;;  %v282_v14 = vld [vmem:[%s1475_s16 + $0x10] sm:$0xff]  ;;  %s1277_s13 = sshra.s32 %s866_s26, 4  ;;  %s1283_s24 = scalar_lea.hbm %s1807_s5, 128  ;;  %s1278_s13 = int_to_ptr.hbm [resolvable:$true] %s1277_s13 }
  0x35   : > { %v284_v10 = vld [vmem:[%s1475_s16 + $0x20] sm:$0xff]  ;;  %v285_v11 = vld [vmem:[%s1475_s16 + $0x28] sm:$0xff]  ;;  %v288_v12 = vpack.c.bf16 %v281_v9, %v280_v8  ;;  %v283_v15 = vld [vmem:[%s1475_s16 + $0x18] sm:$0xff]  ;;  %s1279_s15 = scalar_lea.hbm %s1278_s13, 64  ;;  %p1284_p11 = scmp.lt.s32.totalorder %s1278_s13, %s1807_s5 }
  0x36   : > { %361 = vmatpush.bf16.msra.mxu0 %v1055_v1  ;;  %1067 = vmatpush.bf16.msra.mxu2 %v1055_v1  ;;  %v290_v13 = vpack.c.bf16 %v285_v11, %v284_v10  ;;  %v286_v16 = vld [vmem:[%s1475_s16 + $0x30] sm:$0xff]  ;;  %v287_v17 = vld [vmem:[%s1475_s16 + $0x38] sm:$0xff]  ;;  %v289_v18 = vpack.c.bf16 %v283_v15, %v282_v14  ;;  %v1496_v20 = vld [vmem:[%s1804_s2] ss:$0 sm:$0xff]  ;;  %p1280_p1 = scmp.ne.s32.totalorder %s1278_s13, %s1279_s15  ;;  %p1285_p2 = scmp.lt.s32.totalorder %s1283_s24, %s1279_s15 }
  0x37   : > { %v291_v19 = vpack.c.bf16 %v287_v17, %v286_v16  ;;  %v1064_v23 = vld [vmem:[#allocation7 + $0x38] sm:$0xff]  ;;  %v1063_v26 = vld [vmem:[#allocation7 + $0x30] sm:$0xff]  ;;  %v1062_v34 = vld [vmem:[#allocation7 + $0x28] sm:$0xff] }
  0x38   : > { %813 = vmatpush.bf16.msra.mxu1 %v1064_v23  ;;  %1074 = vmatpush.bf16.msra.mxu3 %v1064_v23  ;;  %v1061_v43 = vld [vmem:[#allocation7 + $0x20] sm:$0xff]  ;;  %v1060_v55 = vld [vmem:[#allocation7 + $0x18] sm:$0xff]  ;;  %v1058_v15 = vld [vmem:[#allocation7 + $0x8] sm:$0xff]  ;;  %p1281_p4 = pnand %p1280_p1, %p1439_p3  ;;  %p1286_p9 = por %p1285_p2, %p1284_p11 }
  0x3a   : > { %362 = vmatpush.bf16.msra.mxu0 %v1054_v2  ;;  %1068 = vmatpush.bf16.msra.mxu2 %v1054_v2  ;;  %v1059_v2 = vld [vmem:[#allocation7 + $0x10] sm:$0xff]  ;;  %p1282_p8 = pneg %p1281_p4 }
  0x3c   : > { %814 = vmatpush.bf16.msra.mxu1 %v1063_v26  ;;  %1075 = vmatpush.bf16.msra.mxu3 %v1063_v26  ;;  %p1287_p10 = pnand %p1286_p9, %p1282_p8 }
  0x3e   : > { %363 = vmatpush.bf16.msra.mxu0 %v1053_v3  ;;  %1069 = vmatpush.bf16.msra.mxu2 %v1053_v3 }
  0x40   : > { %815 = vmatpush.bf16.msra.mxu1 %v1062_v34  ;;  %1076 = vmatpush.bf16.msra.mxu3 %v1062_v34 }
  0x42   : > { %364 = vmatpush.bf16.msra.mxu0 %v1052_v4  ;;  %1070 = vmatpush.bf16.msra.mxu2 %v1052_v4 }
  0x44   : > { %816 = vmatpush.bf16.msra.mxu1 %v1061_v43  ;;  %1077 = vmatpush.bf16.msra.mxu3 %v1061_v43 }
  0x46   : > { %365 = vmatpush.bf16.msra.mxu0 %v1051_v5  ;;  %1071 = vmatpush.bf16.msra.mxu2 %v1051_v5 }
  0x48   : > { %817 = vmatpush.bf16.msra.mxu1 %v1060_v55  ;;  %1078 = vmatpush.bf16.msra.mxu3 %v1060_v55 }
  0x4a   : > { %366 = vmatpush.bf16.msra.mxu0 %v1050_v6  ;;  %1072 = vmatpush.bf16.msra.mxu2 %v1050_v6 }
  0x4c   : > { %818 = vmatpush.bf16.msra.mxu1 %v1059_v2  ;;  %1079 = vmatpush.bf16.msra.mxu3 %v1059_v2 }
  0x4e   : > { %367 = vmatpush.bf16.msra.mxu0 %v1049_v7  ;;  %1073 = vmatpush.bf16.msra.mxu2 %v1049_v7 }
  0x50   : > { %819 = vmatpush.bf16.msra.mxu1 %v1058_v15  ;;  %1080 = vmatpush.bf16.msra.mxu3 %v1058_v15 }
  0x51   : > { %368 = vmatmul.bf16.vlgmr.msra.gmra.mxu0 %v288_v12  ;;  %378 = vmatmul.bf16.vlgmr.msra.gmra.mxu2 %v290_v13 }
  0x61   : > { %373 = vmatmul.bf16.gmra.mxu0 %v289_v18  ;;  %383 = vmatmul.bf16.gmra.mxu2 %v291_v19 }
  0xce   : > { %v369_v21 = vpop.f32.mrf.mxu0 }
  0xcf   : > { %v1499_v22 = vadd.f32 %v1496_v20, %v369_v21 }
  0xd1   : > { %v1502_v24 = vmul.f32 0.70710677, %v1499_v22 }
  0xd3   : > { %v405_v25 = vmul.f32 %v1502_v24, %v1502_v24 }
  0xd4   : > { %v379_v27 = vpop.f32.mrf.mxu2 }
  0xd5   : > { %v1506_v28 = vmin.f32 %v405_v25, 16.0  ;;  %v1509_v29 = vadd.f32 %v1496_v20, %v379_v27 }
  0xd6   : > { %v371_v30 = vpop.f32.mrf.mxu0 }
  0xd7   : > { %v407_v31 = vmul.f32 2.1237322e-06, %v1506_v28  ;;  %v1513_v32 = vmul.f32 0.70710677, %v1509_v29  ;;  %v1516_v33 = vadd.f32 %v1496_v20, %v371_v30  ;;  %v418_v35 = vmul.f32 3.8918573e-05, %v1506_v28 }
  0xd8   : > { %v1057_v30 = vld [vmem:[#allocation7] sm:$0xff] }
  0xd9   : > { %v408_v36 = vadd.f32 0.00028619796, %v407_v31  ;;  %v565_v37 = vmul.f32 %v1513_v32, %v1513_v32  ;;  %v1522_v38 = vmul.f32 0.70710677, %v1516_v33  ;;  %v419_v39 = vadd.f32 0.001143296, %v418_v35  ;;  %820 = vmatpush.bf16.msra.mxu1 %v1057_v30  ;;  %1081 = vmatpush.bf16.msra.mxu3 %v1057_v30 }
  0xdb   : > { %v409_v40 = vmul.f32 %v408_v36, %v1506_v28  ;;  %v1525_v41 = vmin.f32 %v565_v37, 16.0  ;;  %v445_v42 = vmul.f32 %v1522_v38, %v1522_v38  ;;  %v420_v45 = vmul.f32 %v419_v39, %v1506_v28 }
  0xdc   : > { %v381_v44 = vpop.f32.mrf.mxu2 }
  0xdd   : > { %v410_v46 = vadd.f32 0.0036580483, %v409_v40  ;;  %v567_v47 = vmul.f32 2.1237322e-06, %v1525_v41  ;;  %v1531_v48 = vmin.f32 %v445_v42, 16.0  ;;  %v1534_v49 = vadd.f32 %v1496_v20, %v381_v44 }
  0xde   : > { %v374_v50 = vpop.f32.mrf.mxu0  ;;  %v421_v51 = vadd.f32 0.014752088, %v420_v45 }
  0xdf   : > { %v411_v52 = vmul.f32 %v410_v46, %v1506_v28  ;;  %v568_v53 = vadd.f32 0.00028619796, %v567_v47  ;;  %v447_v54 = vmul.f32 2.1237322e-06, %v1531_v48  ;;  %v1539_v56 = vmul.f32 0.70710677, %v1534_v49 }
  0xe0   : > { %v1542_v57 = vadd.f32 %v1496_v20, %v374_v50  ;;  %v422_v58 = vmul.f32 %v421_v51, %v1506_v28  ;;  %v458_v36 = vmul.f32 3.8918573e-05, %v1531_v48  ;;  %v578_v46 = vmul.f32 3.8918573e-05, %v1525_v41 }
  0xe1   : > { %v569_v59 = vmul.f32 %v568_v53, %v1525_v41  ;;  %v448_v60 = vadd.f32 0.00028619796, %v447_v54  ;;  %v605_v61 = vmul.f32 %v1539_v56, %v1539_v56  ;;  %v412_v0 = vadd.f32 0.05243302, %v411_v52 }
  0xe2   : > { %v1549_v62 = vmul.f32 0.70710677, %v1542_v57  ;;  %v423_v63 = vadd.f32 0.112945676, %v422_v58  ;;  %v459_v54 = vadd.f32 0.001143296, %v458_v36 }
  0xe3   : > { %v449_v1 = vmul.f32 %v448_v60, %v1531_v48  ;;  %v1552_v3 = vmin.f32 %v605_v61, 16.0  ;;  %v570_v7 = vadd.f32 0.0036580483, %v569_v59  ;;  %v413_v13 = vmul.f32 %v412_v0, %v1506_v28 }
  0xe4   : > { %v485_v4 = vmul.f32 %v1549_v62, %v1549_v62  ;;  %v384_v5 = vpop.f32.mrf.mxu2  ;;  %v424_v6 = vmul.f32 %v423_v63, %v1506_v28  ;;  %v579_v60 = vadd.f32 0.001143296, %v578_v46  ;;  %v460_v2 = vmul.f32 %v459_v54, %v1531_v48 }
  0xe5   : > { %v1558_v8 = vadd.f32 %v1496_v20, %v384_v5  ;;  %v607_v9 = vmul.f32 2.1237322e-06, %v1552_v3  ;;  %v450_v14 = vadd.f32 0.0036580483, %v449_v1  ;;  %v571_v23 = vmul.f32 %v570_v7, %v1525_v41 }
  0xe6   : > { %v1561_v10 = vmin.f32 %v485_v4, 16.0  ;;  %v376_v11 = vpop.f32.mrf.mxu0  ;;  %v425_v12 = vadd.f32 0.4994258, %v424_v6  ;;  %v414_v31 = vadd.f32 0.18741608, %v413_v13 }
  0xe7   : > { %v608_v16 = vadd.f32 0.00028619796, %v607_v9  ;;  %v1566_v18 = vmul.f32 0.70710677, %v1558_v8  ;;  %v1569_v19 = vadd.f32 %v1496_v20, %v376_v11  ;;  %v451_v34 = vmul.f32 %v450_v14, %v1531_v48 }
  0xe8   : > { %v487_v17 = vmul.f32 2.1237322e-06, %v1561_v10  ;;  %v426_v21 = vmul.f32 %v425_v12, %v1506_v28  ;;  %v572_v47 = vadd.f32 0.05243302, %v571_v23  ;;  %v415_v55 = vmul.f32 %v414_v31, %v1506_v28 }
  0xe9   : > { %v609_v25 = vmul.f32 %v608_v16, %v1552_v3  ;;  %v645_v27 = vmul.f32 %v1566_v18, %v1566_v18  ;;  %v1578_v35 = vmul.f32 0.70710677, %v1569_v19  ;;  %v452_v51 = vadd.f32 0.05243302, %v451_v34 }
  0xea   : > { %v488_v26 = vadd.f32 0.00028619796, %v487_v17  ;;  %v1584_v43 = vadd.f32 1.0, %v426_v21  ;;  %v573_v61 = vmul.f32 %v572_v47, %v1525_v41  ;;  %v416_v5 = vadd.f32 1.1283791, %v415_v55 }
  0xeb   : > { %v610_v37 = vadd.f32 0.0036580483, %v609_v25  ;;  %v1582_v40 = vmin.f32 %v645_v27, 16.0  ;;  %v525_v44 = vmul.f32 %v1578_v35, %v1578_v35  ;;  %v453_v0 = vmul.f32 %v452_v51, %v1531_v48 }
  0xec   : > { %v489_v39 = vmul.f32 %v488_v26, %v1561_v10  ;;  %v386_v42 = vpop.f32.mrf.mxu2  ;;  %1157 = vrcp.f32 %v1584_v43  ;;  %v580_v11 = vmul.f32 %v579_v60, %v1525_v41  ;;  %v574_v12 = vadd.f32 0.18741608, %v573_v61 }
  0xed   : > { %v1589_v45 = vadd.f32 %v1496_v20, %v386_v42  ;;  %v647_v50 = vmul.f32 2.1237322e-06, %v1582_v40  ;;  %v611_v52 = vmul.f32 %v610_v37, %v1552_v3  ;;  %v1595_v53 = vmin.f32 %v525_v44, 16.0 }
  0xee   : > { %v490_v58 = vadd.f32 0.0036580483, %v489_v39  ;;  %v454_v14 = vadd.f32 0.18741608, %v453_v0  ;;  %v461_v17 = vadd.f32 0.014752088, %v460_v2  ;;  %v417_v21 = vmul.f32 %v416_v5, %v1502_v24 }
  0xef   : > { %v648_v20 = vadd.f32 0.00028619796, %v647_v50  ;;  %v1599_v59 = vmul.f32 0.70710677, %v1589_v45  ;;  %v527_v63 = vmul.f32 2.1237322e-06, %v1595_v53  ;;  %vm433_vm1 = vweird.f32 %v1584_v43 }
  0xf0   : > { %v612_v1 = vadd.f32 0.05243302, %v611_v52  ;;  %v491_v6 = vmul.f32 %v490_v58, %v1561_v10  ;;  %v462_v30 = vmul.f32 %v461_v17, %v1531_v48  ;;  %v581_v31 = vadd.f32 0.014752088, %v580_v11 }
  0xf1   : > { %v649_v28 = vmul.f32 %v648_v20, %v1582_v40  ;;  %v685_v7 = vmul.f32 %v1599_v59, %v1599_v59  ;;  %v528_v13 = vadd.f32 0.00028619796, %v527_v63  ;;  %v437_v36 = vand.u32 2147483647, %v1584_v43 }
  0xf2   : > { %v1158_v4 = vpop.eup %1157  ;;  %v613_v15 = vmul.f32 %v612_v1, %v1552_v3  ;;  %v492_v23 = vadd.f32 0.05243302, %v491_v6  ;;  %v439_v37 = vand.u32 2147483648, %v1584_v43  ;;  %v463_v24 = vadd.f32 0.112945676, %v462_v30 }
  0xf3   : > { %v429_v9 = vmul.f32 %v1158_v4, %v1584_v43  ;;  %v650_v25 = vadd.f32 0.0036580483, %v649_v28  ;;  %v1613_v26 = vmin.f32 %v685_v7, 16.0  ;;  %vm434_vm0 = vweird.f32 %v1158_v4 }
  0xf4   : > { %v529_v34 = vmul.f32 %v528_v13, %v1595_v53  ;;  %v614_v39 = vadd.f32 0.18741608, %v613_v15  ;;  %v582_v44 = vmul.f32 %v581_v31, %v1525_v41  ;;  %v575_v46 = vmul.f32 %v574_v12, %v1525_v41  ;;  %vm1624_vm2 = vmor %vm433_vm1, %vm434_vm0 }
  0xf5   : > { %v430_v16 = vsub.f32 1.0, %v429_v9  ;;  %v493_v47 = vmul.f32 %v492_v23, %v1561_v10  ;;  %v651_v50 = vmul.f32 %v650_v25, %v1582_v40  ;;  %v618_v52 = vmul.f32 3.8918573e-05, %v1552_v3 }
  0xf6   : > { %v687_v54 = vmul.f32 2.1237322e-06, %v1613_v26  ;;  %v464_v55 = vmul.f32 %v463_v24, %v1531_v48  ;;  %v583_v58 = vadd.f32 0.112945676, %v582_v44  ;;  %v455_v20 = vmul.f32 %v454_v14, %v1531_v48 }
  0xf7   : > { %v431_v27 = vmul.f32 %v1158_v4, %v430_v16  ;;  %v530_v60 = vadd.f32 0.0036580483, %v529_v34  ;;  %v440_v61 = vor.u32 1.1754944e-38, %v439_v37  ;;  %v619_v63 = vadd.f32 0.001143296, %v618_v52 }
  0xf8   : > { %v615_v0 = vmul.f32 %v614_v39, %v1552_v3  ;;  %vm438_vm3 = vcmp.eq.f32.partialorder %v437_v36, 8.507059e+37  ;;  %v465_v1 = vadd.f32 0.4994258, %v464_v55  ;;  %v584_v2 = vmul.f32 %v583_v58, %v1525_v41 }
  0xf9   : > { %v432_v42 = vadd.f32 %v1158_v4, %v431_v27  ;;  %v494_v5 = vadd.f32 0.18741608, %v493_v47  ;;  %v620_v28 = vmul.f32 %v619_v63, %v1552_v3  ;;  %v652_v7 = vadd.f32 0.05243302, %v651_v50 }
  0xfa   : > { %v688_v9 = vadd.f32 0.00028619796, %v687_v54  ;;  %v466_v11 = vmul.f32 %v465_v1, %v1531_v48  ;;  %v585_v12 = vadd.f32 0.4994258, %v584_v2  ;;  %v1640_v13 = vmul.f32 0.5, %v1499_v22 }
  0xfb   : > { %v436_v43 = vsel %vm1624_vm2, %v1158_v4, %v432_v42  ;;  %v498_v4 = vmul.f32 3.8918573e-05, %v1561_v10  ;;  %v531_v14 = vmul.f32 %v530_v60, %v1595_v53  ;;  %v621_v15 = vadd.f32 0.014752088, %v620_v28 }
  0xfc   : > { %v441_v6 = vsel %vm438_vm3, %v440_v61, %v436_v43  ;;  %v576_v17 = vadd.f32 1.1283791, %v575_v46  ;;  %v1643_v25 = vadd.f32 1.0, %v466_v11  ;;  %v586_v27 = vmul.f32 %v585_v12, %v1525_v41 }
  0xfd   : > { %v499_v16 = vadd.f32 0.001143296, %v498_v4  ;;  %v442_v23 = vmul.f32 %v441_v6, %v417_v21  ;;  %v456_v30 = vadd.f32 1.1283791, %v455_v20  ;;  %v495_v31 = vmul.f32 %v494_v5, %v1561_v10 }
  0xfe   : > { %v622_v34 = vmul.f32 %v621_v15, %v1552_v3  ;;  %v616_v36 = vadd.f32 1.1283791, %v615_v0  ;;  %v653_v22 = vmul.f32 %v652_v7, %v1582_v40  ;;  %v689_v37 = vmul.f32 %v688_v9, %v1613_v26 }
  0xff   : > { %v500_v48 = vmul.f32 %v499_v16, %v1561_v10  ;;  %1159 = vrcp.f32 %v1643_v25  ;;  %v1653_v21 = vmul.f32 0.5, %v1509_v29  ;;  %v532_v39 = vadd.f32 0.05243302, %v531_v14 }
 0x100   : > { %v1655_v42 = vadd.f32 1.0, %v586_v27  ;;  %v538_v41 = vmul.f32 3.8918573e-05, %v1595_v53  ;;  %v1659_v24 = vmul.f32 0.5, %v1516_v33  ;;  %v1003_v44 = vclamps-f32 %v442_v23, 1.0 }
 0x101   : > { %v623_v46 = vadd.f32 0.112945676, %v622_v34  ;;  %v501_v47 = vadd.f32 0.014752088, %v500_v48  ;;  %v1662_v50 = vmul.f32 %v576_v17, %v1513_v32  ;;  %v457_v51 = vmul.f32 %v456_v30, %v1522_v38 }
 0x102   : > { %v1665_v52 = vadd.f32 1.1283791, %v495_v31  ;;  %1161 = vrcp.f32 %v1655_v42  ;;  %v1668_v29 = vadd.f32 0.18741608, %v653_v22  ;;  %v1670_v54 = vadd.f32 0.0036580483, %v689_v37 }
 0x103   : > { %v624_v43 = vmul.f32 %v623_v46, %v1552_v3  ;;  %v502_v33 = vmul.f32 %v501_v47, %v1561_v10  ;;  %v1675_v55 = vmul.f32 %v616_v36, %v1539_v56  ;;  %v539_v58 = vadd.f32 0.001143296, %v538_v41 }
 0x104   : > { %v658_v32 = vmul.f32 3.8918573e-05, %v1582_v40  ;;  %v698_v38 = vmul.f32 3.8918573e-05, %v1613_v26  ;;  %v533_v60 = vmul.f32 %v532_v39, %v1595_v53  ;;  %v725_v61 = vadd.f32 1.0, %v1003_v44 }
 0x105   : > { %v1160_v20 = vpop.eup %1159  ;;  %v625_v63 = vadd.f32 0.4994258, %v624_v43  ;;  %v503_v0 = vadd.f32 0.112945676, %v502_v33  ;;  %vm473_vm4 = vweird.f32 %v1643_v25  ;;  %v540_v2 = vmul.f32 %v539_v58, %v1595_v53 }
 0x106   : > { %v469_v1 = vmul.f32 %v1160_v20, %v1643_v25  ;;  %v659_v5 = vadd.f32 0.001143296, %v658_v32  ;;  %v479_v56 = vand.u32 2147483648, %v1643_v25  ;;  %v699_v4 = vadd.f32 0.001143296, %v698_v38 }
 0x107   : > { %v626_v6 = vmul.f32 %v625_v63, %v1552_v3  ;;  %v504_v28 = vmul.f32 %v503_v0, %v1561_v10  ;;  %v477_v11 = vand.u32 2147483647, %v1643_v25  ;;  %v541_v12 = vadd.f32 0.014752088, %v540_v2 }
 0x108   : > { %v1162_v7 = vpop.eup %1161  ;;  %v470_v9 = vsub.f32 1.0, %v469_v1  ;;  %v660_v14 = vmul.f32 %v659_v5, %v1582_v40  ;;  %vm474_vm5 = vweird.f32 %v1160_v20  ;;  %v700_v30 = vmul.f32 %v699_v4, %v1613_v26 }
 0x109   : > { %v589_v15 = vmul.f32 %v1162_v7, %v1655_v42  ;;  %v1689_v16 = vadd.f32 1.0, %v626_v6  ;;  %v505_v17 = vadd.f32 0.4994258, %v504_v28  ;;  %v542_v27 = vmul.f32 %v541_v12, %v1595_v53  ;;  %vm475_vm6 = vmor %vm473_vm4, %vm474_vm5 }
 0x10a   : > { %v471_v23 = vmul.f32 %v1160_v20, %v470_v9  ;;  %v661_v3 = vadd.f32 0.014752088, %v660_v14  ;;  %v480_v31 = vor.u32 1.1754944e-38, %v479_v56  ;;  %v597_v48 = vand.u32 2147483647, %v1655_v42 }
 0x10b   : > { %v590_v34 = vsub.f32 1.0, %v589_v15  ;;  %1163 = vrcp.f32 %v1689_v16  ;;  %v599_v22 = vand.u32 2147483648, %v1655_v42  ;;  %v506_v37 = vmul.f32 %v505_v17, %v1561_v10 }
 0x10c   : > { %v472_v36 = vadd.f32 %v1160_v20, %v471_v23  ;;  %v543_v39 = vadd.f32 0.112945676, %v542_v27  ;;  %vm594_vm7 = vweird.f32 %v1162_v7  ;;  %v662_v44 = vmul.f32 %v661_v3, %v1582_v40 }
 0x10d   : > { %v591_v41 = vmul.f32 %v1162_v7, %v590_v34  ;;  %v701_v46 = vadd.f32 0.014752088, %v700_v30  ;;  %vm478_vm8 = vcmp.eq.f32.partialorder %v477_v11, 8.507059e+37  ;;  %v1701_v43 = vadd.f32 1.0, %v506_v37 }
 0x10e   : > { %v476_v47 = vsel %vm475_vm6, %v1160_v20, %v472_v36  ;;  %v544_v33 = vmul.f32 %v543_v39, %v1595_v53  ;;  %vm593_vm9 = vweird.f32 %v1655_v42  ;;  %v663_v10 = vadd.f32 0.112945676, %v662_v44 }
 0x10f   : > { %v481_v58 = vsel %vm478_vm8, %v480_v31, %v476_v47  ;;  %v592_v32 = vadd.f32 %v1162_v7, %v591_v41  ;;  %vm595_vm10 = vmor %vm593_vm9, %vm594_vm7  ;;  %v600_v25 = vor.u32 1.1754944e-38, %v599_v22  ;;  %1165 = vrcp.f32 %v1701_v43 }
 0x110   : > { %v482_v38 = vmul.f32 %v481_v58, %v457_v51  ;;  %v702_v63 = vmul.f32 %v701_v46, %v1613_v26  ;;  %vm598_vm11 = vcmp.eq.f32.partialorder %v597_v48, 8.507059e+37  ;;  %v545_v20 = vadd.f32 0.4994258, %v544_v33 }
 0x111   : > { %v1164_v0 = vpop.eup %1163  ;;  %v596_v1 = vsel %vm595_vm10, %v1162_v7, %v592_v32  ;;  %v664_v2 = vmul.f32 %v663_v10, %v1582_v40  ;;  %v691_v5 = vmul.f32 %v1670_v54, %v1613_v26  ;;  %v534_v51 = vadd.f32 0.18741608, %v533_v60 }
 0x112   : > { %v1004_v56 = vclamps-f32 %v482_v38, 1.0  ;;  %v601_v6 = vsel %vm598_vm11, %v600_v25, %v596_v1  ;;  %v629_v42 = vmul.f32 %v1164_v0, %v1689_v16  ;;  %v733_v28 = vmul.f32 %v725_v61, %v1640_v13 }
 0x113   : > { %v637_v4 = vand.u32 2147483647, %v1689_v16  ;;  %v546_v9 = vmul.f32 %v545_v20, %v1595_v53  ;;  %v665_v12 = vadd.f32 0.4994258, %v664_v2  ;;  %v703_v14 = vadd.f32 0.112945676, %v702_v63 }
 0x114   : > { %v726_v11 = vadd.f32 1.0, %v1004_v56  ;;  %v630_v7 = vsub.f32 1.0, %v629_v42  ;;  %v602_v15 = vmul.f32 %v601_v6, %v1662_v50  ;;  %vm634_vm12 = vweird.f32 %v1164_v0 }
 0x115   : > { %v639_v54 = vand.u32 2147483648, %v1689_v16  ;;  %v1716_v17 = vadd.f32 1.0, %v546_v9  ;;  %v1166_v23 = vpop.eup %1165  ;;  %v666_v13 = vmul.f32 %v665_v12, %v1582_v40  ;;  %v704_v61 = vmul.f32 %v703_v14, %v1613_v26 }
 0x116   : > { %v734_v60 = vmul.f32 %v726_v11, %v1659_v24  ;;  %v631_v27 = vmul.f32 %v1164_v0, %v630_v7  ;;  %v535_v3 = vmul.f32 %v534_v51, %v1595_v53  ;;  %v692_v30 = vadd.f32 0.05243302, %v691_v5 }
 0x117   : > { %v509_v31 = vmul.f32 %v1166_v23, %v1701_v43  ;;  %1167 = vrcp.f32 %v1716_v17  ;;  %vm633_vm13 = vweird.f32 %v1689_v16  ;;  %vm638_vm14 = vcmp.eq.f32.partialorder %v637_v4, 8.507059e+37 }
 0x118   : > { %v741_v50 = vpack.c.bf16 %v734_v60, %v733_v28  ;;  %v632_v34 = vadd.f32 %v1164_v0, %v631_v27  ;;  %v1007_v48 = vclamps-f32 %v602_v15, 1.0  ;;  %vm635_vm15 = vmor %vm633_vm13, %vm634_vm12  ;;  %v640_v24 = vor.u32 1.1754944e-38, %v639_v54 }
 0x119   : > { %v510_v36 = vsub.f32 1.0, %v509_v31  ;;  %v1726_v22 = vadd.f32 1.0, %v666_v13  ;;  %v517_v53 = vand.u32 2147483647, %v1701_v43  ;;  %v519_v39 = vand.u32 2147483648, %v1701_v43 }
 0x11a   : > { %821 = vmatmul.bf16.vlgmr.msra.gmra.mxu1 %v741_v50  ;;  %v636_v37 = vsel %vm635_vm15, %v1164_v0, %v632_v34  ;;  %v705_v41 = vadd.f32 0.4994258, %v704_v61  ;;  %vm514_vm0 = vweird.f32 %v1166_v23  ;;  %v394_v16 = vmul.f32 0.5, %v1534_v49 }
 0x11b   : > { %v641_v44 = vsel %vm638_vm14, %v640_v24, %v636_v37  ;;  %v511_v46 = vmul.f32 %v1166_v23, %v510_v36  ;;  %1169 = vrcp.f32 %v1726_v22  ;;  %v497_v47 = vmul.f32 %v1665_v52, %v1549_v62 }
 0x11c   : > { %v655_v33 = vmul.f32 %v1668_v29, %v1582_v40  ;;  %v642_v58 = vmul.f32 %v641_v44, %v1675_v55  ;;  %v729_v10 = vadd.f32 1.0, %v1007_v48  ;;  %vm513_vm1 = vweird.f32 %v1701_v43 }
 0x11d   : > { %v1168_v32 = vpop.eup %1167  ;;  %v512_v38 = vadd.f32 %v1166_v23, %v511_v46  ;;  %v706_v25 = vmul.f32 %v705_v41, %v1613_v26  ;;  %v693_v63 = vmul.f32 %v692_v30, %v1613_v26  ;;  %vm515_vm2 = vmor %vm513_vm1, %vm514_vm0  ;;  %v520_v49 = vor.u32 1.1754944e-38, %v519_v39 }
 0x11e   : > { %v1008_v0 = vclamps-f32 %v642_v58, 1.0  ;;  %v549_v1 = vmul.f32 %v1168_v32, %v1716_v17  ;;  %v536_v62 = vadd.f32 1.1283791, %v535_v3  ;;  %vm518_vm3 = vcmp.eq.f32.partialorder %v517_v53, 8.507059e+37 }
 0x11f   : > { %v516_v52 = vsel %vm515_vm2, %v1166_v23, %v512_v38  ;;  %v1741_v40 = vadd.f32 1.0, %v706_v25  ;;  %v557_v2 = vand.u32 2147483647, %v1716_v17  ;;  %v737_v5 = vmul.f32 %v729_v10, %v1653_v21 }
 0x120   : > { %v730_v29 = vadd.f32 1.0, %v1008_v0  ;;  %v521_v55 = vsel %vm518_vm3, %v520_v49, %v516_v52  ;;  %v550_v20 = vsub.f32 1.0, %v549_v1  ;;  %vm554_vm4 = vweird.f32 %v1168_v32 }
 0x121   : > { %v1170_v43 = vpop.eup %1169  ;;  %v559_v56 = vand.u32 2147483648, %v1716_v17  ;;  %1171 = vrcp.f32 %v1741_v40  ;;  %v522_v42 = vmul.f32 %v521_v55, %v497_v47  ;;  %v656_v4 = vadd.f32 1.1283791, %v655_v33 }
 0x122   : > { %v738_v6 = vmul.f32 %v730_v29, %v394_v16  ;;  %v551_v51 = vmul.f32 %v1168_v32, %v550_v20  ;;  %v669_v28 = vmul.f32 %v1170_v43, %v1726_v22  ;;  %v537_v9 = vmul.f32 %v536_v62, %v1578_v35  ;;  %v1156_v29 = vld [vmem:[%s1806_s4] ss:$0 sm:$0xff] }
 0x123   : > { %v694_v11 = vadd.f32 0.18741608, %v693_v63  ;;  %vm553_vm5 = vweird.f32 %v1716_v17  ;;  %vm558_vm7 = vcmp.eq.f32.partialorder %v557_v2, 8.507059e+37  ;;  %v560_v21 = vor.u32 1.1754944e-38, %v559_v56 }
 0x124   : > { %v743_v7 = vpack.c.bf16 %v738_v6, %v737_v5  ;;  %v552_v12 = vadd.f32 %v1168_v32, %v551_v51  ;;  %v670_v14 = vsub.f32 1.0, %v669_v28  ;;  %vm555_vm6 = vmor %vm553_vm5, %vm554_vm4  ;;  %v677_v15 = vand.u32 2147483647, %v1726_v22 }
 0x125   : > { %v679_v54 = vand.u32 2147483648, %v1726_v22  ;;  %v1005_v23 = vclamps-f32 %v522_v42, 1.0  ;;  %vm674_vm8 = vweird.f32 %v1170_v43  ;;  %v391_v35 = vmul.f32 0.5, %v1542_v57 }
 0x126   : > { %831 = vmatmul.bf16.vlgmr.msra.gmra.mxu3 %v743_v7  ;;  %v556_v60 = vsel %vm555_vm6, %v1168_v32, %v552_v12  ;;  %v671_v27 = vmul.f32 %v1170_v43, %v670_v14  ;;  %v695_v61 = vmul.f32 %v694_v11, %v1613_v26  ;;  %vm673_vm9 = vweird.f32 %v1726_v22 }
 0x127   : > { %v1172_v13 = vpop.eup %1171  ;;  %v561_v3 = vsel %vm558_vm7, %v560_v21, %v556_v60  ;;  %v657_v50 = vmul.f32 %v656_v4, %v1566_v18  ;;  %v392_v34 = vmul.f32 0.5, %v1569_v19  ;;  %vm675_vm10 = vmor %vm673_vm9, %vm674_vm8  ;;  %vm678_vm11 = vcmp.eq.f32.partialorder %v677_v15, 8.507059e+37 }
 0x128   : > { %v562_v17 = vmul.f32 %v561_v3, %v537_v9  ;;  %v672_v30 = vadd.f32 %v1170_v43, %v671_v27  ;;  %v709_v31 = vmul.f32 %v1172_v13, %v1741_v40  ;;  %v680_v48 = vor.u32 1.1754944e-38, %v679_v54 }
 0x129   : > { %v727_v36 = vadd.f32 1.0, %v1005_v23  ;;  %v696_v53 = vadd.f32 1.1283791, %v695_v61  ;;  %v717_v39 = vand.u32 2147483647, %v1741_v40  ;;  %v719_v41 = vand.u32 2147483648, %v1741_v40 }
 0x12a   : > { %v1006_v24 = vclamps-f32 %v562_v17, 1.0  ;;  %v676_v37 = vsel %vm675_vm10, %v1170_v43, %v672_v30  ;;  %v710_v57 = vsub.f32 1.0, %v709_v31  ;;  %vm714_vm12 = vweird.f32 %v1172_v13 }
 0x12b   : > { %v681_v26 = vsel %vm678_vm11, %v680_v48, %v676_v37  ;;  %v735_v18 = vmul.f32 %v727_v36, %v391_v35  ;;  %vm713_vm13 = vweird.f32 %v1741_v40  ;;  %v697_v47 = vmul.f32 %v696_v53, %v1599_v59 }
 0x12c   : > { %v728_v22 = vadd.f32 1.0, %v1006_v24  ;;  %v682_v44 = vmul.f32 %v681_v26, %v657_v50  ;;  %v711_v46 = vmul.f32 %v1172_v13, %v710_v57  ;;  %vm715_vm14 = vmor %vm713_vm13, %vm714_vm12  ;;  %v720_v33 = vor.u32 1.1754944e-38, %v719_v41 }
 0x12d   : > { %vm718_vm15 = vcmp.eq.f32.partialorder %v717_v39, 8.507059e+37  ;;  %v395_v49 = vmul.f32 0.5, %v1558_v8  ;;  %v396_v1 = vmul.f32 0.5, %v1589_v45 }
 0x12e   : > { %v736_v16 = vmul.f32 %v728_v22, %v392_v34  ;;  %v712_v19 = vadd.f32 %v1172_v13, %v711_v46  ;;  %v1009_v32 = vclamps-f32 %v682_v44, 1.0 }
 0x130   : > { %v742_v58 = vpack.c.bf16 %v736_v16, %v735_v18  ;;  %v716_v10 = vsel %vm715_vm14, %v1172_v13, %v712_v19  ;;  %v731_v0 = vadd.f32 1.0, %v1009_v32 }
 0x131   : > { %v721_v38 = vsel %vm718_vm15, %v720_v33, %v716_v10 }
 0x132   : > { %826 = vmatmul.bf16.gmra.mxu1 %v742_v58  ;;  %v722_v25 = vmul.f32 %v721_v38, %v697_v47  ;;  %v739_v52 = vmul.f32 %v731_v0, %v395_v49 }
 0x134   : > { %v1010_v63 = vclamps-f32 %v722_v25, 1.0 }
 0x136   : > { %v732_v62 = vadd.f32 1.0, %v1010_v63 }
 0x138   : > { %v740_v40 = vmul.f32 %v732_v62, %v396_v1 }
 0x13a   : > { %v744_v59 = vpack.c.bf16 %v740_v40, %v739_v52 }
 0x13c   : > { %836 = vmatmul.bf16.gmra.mxu3 %v744_v59 }
 0x197   : > { %v822_v55 = vpop.f32.mrf.mxu1 }
 0x198   : > { %v823_v20 = vadd.f32 %v1156_v29, %v822_v55 }
 0x19a   : > { %842 = vst [vmem:[%s277_s11] sm:$0xff] %v823_v20 }
 0x19f   : > { %v824_v2 = vpop.f32.mrf.mxu1 }
 0x1a0   : > { %v825_v43 = vadd.f32 %v1156_v29, %v824_v2 }
 0x1a2   : > { %843 = vst [vmem:[%s277_s11 + $0x8] sm:$0xff] %v825_v43 }
 0x1a9   : > { %v832_v8 = vpop.f32.mrf.mxu3 }
 0x1aa   : > { %v833_v45 = vadd.f32 %v1156_v29, %v832_v8 }
 0x1ac   : > { %846 = vst [vmem:[%s277_s11 + $0x20] sm:$0xff] %v833_v45 }
 0x1af   : > { %v827_v5 = vpop.f32.mrf.mxu1 }
 0x1b0   : > { %v828_v56 = vadd.f32 %v1156_v29, %v827_v5 }
 0x1b1   : > { %v834_v6 = vpop.f32.mrf.mxu3 }
 0x1b2   : > { %844 = vst [vmem:[%s277_s11 + $0x10] sm:$0xff] %v828_v56  ;;  %v835_v42 = vadd.f32 %v1156_v29, %v834_v6 }
 0x1b4   : > { %847 = vst [vmem:[%s277_s11 + $0x28] sm:$0xff] %v835_v42 }
 0x1b7   : > { %v829_v51 = vpop.f32.mrf.mxu1 }
 0x1b8   : > { %v830_v28 = vadd.f32 %v1156_v29, %v829_v51 }
 0x1ba   : > { %845 = vst [vmem:[%s277_s11 + $0x18] sm:$0xff] %v830_v28 }
 0x1bf   : > { %v837_v4 = vpop.f32.mrf.mxu3 }
 0x1c0   : > { %v838_v9 = vadd.f32 %v1156_v29, %v837_v4 }
 0x1c2   : > { %848 = vst [vmem:[%s277_s11 + $0x30] sm:$0xff] %v838_v9 }
 0x1c7   : > { %v839_v11 = vpop.f32.mrf.mxu3 }
 0x1c8   : > { %v840_v7 = vadd.f32 %v1156_v29, %v839_v11 }
 0x1ca   : > { %849 = vst [vmem:[%s277_s11 + $0x38] sm:$0xff] %v840_v7 }
 0x1cb   : > { %1290 = shalt.err (!%p1287_p10)
}
 0x1cc   : > { %s1341_s8 = smov 128   ;;  %s1342_s10 = smov 8  }
 0x1cd   : > { %1092 = dma.vmem_to_hbm [thread:$0]  (%p1439_p3), %s864_s6, 1024, %s866_s26, %s851_s7, %s1341_s8, %s1341_s8, %s1342_s10  }
 0x1ce PF: > { %s880_s11 = sand.u32 1, %s1321_s18   ;;  %p1815_p12 = scmp.ge.s32.totalorder %s1333_s21, 2 }
 0x1cf   : > { %s881_s12 = scalar_lea.sflag [#allocation4], %s880_s11 }
 0x1d0   : > { %p1106_p13 = pnand %p1815_p12, %p1408_p6 }
 0x1d2   : > { %p1107_p0 = pneg %p1106_p13 }
 0x1d4   : > { %1316 = dma.done.wait (%p1107_p0), %s881_s12, 1024  }
 0x1d5   : > { %1318 = vsyncadd (%p1107_p0), %s881_s12, 4294966272  ;;  %p19_p5 = scmp.ge.s32.totalorder %s1429_s14, 4   ;;  %s1816_s18 = smov %s1325_s19 }
 0x1d6   : > { %s1817_s19 = smov %s1329_s20  ;;  %s1818_s20 = smov %s1445_s23 }
 0x1d7   : > { %s1819_s21 = smov %s1429_s14  ;;  %21 = sbr.rel (!%p19_p5) target bundleno = 6 (0x6), region = 93 }
 0x1dc   :  { %887 = vsyncpa [#allocation3], 1 }
 0x1dd   :  { %889 = vsyncpa [#allocation3 + $0x1], 1 }
 0x1de   :  { %890 = vsyncpa [#allocation6], 1 }
 0x1df   :  { %891 = vsyncpa [#allocation4], 1 }
 0x1e0   :  { %893 = vsyncpa [#allocation4 + $0x1], 1 }

</bundles_post_ra>
